<compile_context>
chip_gen: v5e
topology: v5e:2x2
jax: 0.10.0
libtpu: 0.0.40
codegen_flags: <defaults>
</compile_context>

<pallas_src>
import numpy as np
import jax
import jax.numpy as jnp
from jax.experimental import pallas as pl
from jax.experimental.pallas import tpu as pltpu

# ---- model sizes (args.*) -------------------------------------------------
B     = 8      # batch
D_IMG = 64     # args.D_img
D_HID = 128    # args.D_hid  (lane-dense: multiple of 128)


# ---------------------------------------------------------------------------
# Kernel: fused img_to_hid [-> relu -> hid_to_hid] [-> unit_norm]
# ---------------------------------------------------------------------------
def _make_beholder_kernel(two_fc: bool, unit_norm: bool):
    def kernel(*refs):
        if two_fc:
            img_ref, w1_ref, b1_ref, w2_ref, b2_ref, out_ref = refs
        else:
            img_ref, w1_ref, b1_ref, out_ref = refs

        # img_to_hid
        h = jnp.dot(img_ref[...], w1_ref[...],
                    preferred_element_type=jnp.float32) + b1_ref[...]
        # dropout: identity in eval mode.
        if two_fc:
            h = jnp.dot(jnp.maximum(h, 0.0), w2_ref[...],
                        preferred_element_type=jnp.float32) + b2_ref[...]
        if unit_norm:
            norm = jnp.sqrt(jnp.sum(h * h, axis=1, keepdims=True)) + 1e-9
            h = h / norm
        out_ref[...] = h

    return kernel


def beholder_pallas(img, w1, b1, w2=None, b2=None, *,
                    two_fc=False, unit_norm=False):
    Bb = img.shape[0]
    Dh = w1.shape[1]
    args = [img, w1, b1] + ([w2, b2] if two_fc else [])
    vmem = pl.BlockSpec(memory_space=pltpu.MemorySpace.VMEM)
    return pl.pallas_call(
        _make_beholder_kernel(two_fc, unit_norm),
        out_shape=jax.ShapeDtypeStruct((Bb, Dh), jnp.float32),
        in_specs=[vmem] * len(args),
        out_specs=vmem,
    )(*args)


# ---------------------------------------------------------------------------
# Pure-JAX reference (same math, no Pallas) for validation.
# ---------------------------------------------------------------------------
def beholder_ref(img, w1, b1, w2=None, b2=None, *,
                 two_fc=False, unit_norm=False):
    h = jnp.dot(img, w1, preferred_element_type=jnp.float32) + b1
    if two_fc:
        h = jnp.dot(jnp.maximum(h, 0.0), w2,
                    preferred_element_type=jnp.float32) + b2
    if unit_norm:
        norm = jnp.sqrt(jnp.sum(h * h, axis=1, keepdims=True)) + 1e-9
        h = h / norm
    return h


# ---------------------------------------------------------------------------
# Deterministic parameter init (PyTorch Linear default: U(-1/sqrt(fan_in), ...))
# ---------------------------------------------------------------------------
def init_params(key):
    k1, k2, k3, k4, k5 = jax.random.split(key, 5)
    s1 = 1.0 / np.sqrt(D_IMG)
    s2 = 1.0 / np.sqrt(D_HID)
    return {
        # stored pre-transposed so the kernel computes x @ W
        'w1': jax.random.uniform(k1, (D_IMG, D_HID), jnp.float32, -s1, s1),
        'b1': jax.random.uniform(k2, (1, D_HID), jnp.float32, -s1, s1),
        'w2': jax.random.uniform(k3, (D_HID, D_HID), jnp.float32, -s2, s2),
        'b2': jax.random.uniform(k4, (1, D_HID), jnp.float32, -s2, s2),
        'img_key': k5,
    }


# ---------------------------------------------------------------------------
if __name__ == "__main__":
    params = init_params(jax.random.PRNGKey(0))
    img = jax.random.normal(params['img_key'], (B, D_IMG), jnp.float32)

    configs = [
        dict(two_fc=False, unit_norm=False),   # Beholder defaults
        dict(two_fc=True,  unit_norm=True),    # full forward with both branches
    ]

    for cfg in configs:
        out = beholder_pallas(img, params['w1'], params['b1'],
                              params['w2'], params['b2'], **cfg)
        out = jax.block_until_ready(out)

        ref = beholder_ref(img, params['w1'], params['b1'],
                           params['w2'], params['b2'], **cfg)
        ref = jax.block_until_ready(ref)

        assert out.shape == (B, D_HID), out.shape
        err = float(jnp.max(jnp.abs(out - ref)))
        assert err < 1e-4, f"mismatch vs reference for {cfg}: max abs err = {err}"

    print("KERNEL_OK")
</pallas_src>

<mosaic_0001>
module attributes {stable_mosaic.version = 11 : i64} {
  func.func @kernel(%arg0: memref<8x64xf32, #tpu.memory_space<vmem>>, %arg1: memref<64x128xf32, #tpu.memory_space<vmem>>, %arg2: memref<1x128xf32, #tpu.memory_space<vmem>>, %arg3: memref<8x128xf32, #tpu.memory_space<vmem>>) attributes {dimension_semantics = [], scalar_prefetch = 0 : i64, scratch_operands = 0 : i64, tpu.core_type = #tpu.core_type<tc>} {
    %c0 = arith.constant 0 : index
    %c0_0 = arith.constant 0 : index
    %0 = vector.load %arg0[%c0, %c0_0] : memref<8x64xf32, #tpu.memory_space<vmem>>, vector<8x64xf32>
    %c0_1 = arith.constant 0 : index
    %c0_2 = arith.constant 0 : index
    %1 = vector.load %arg1[%c0_1, %c0_2] : memref<64x128xf32, #tpu.memory_space<vmem>>, vector<64x128xf32>
    %cst = arith.constant dense<0.000000e+00> : vector<8x128xf32>
    %2 = tpu.matmul %0, %1, %cst {dimension_numbers = #tpu.dot_dimension_numbers<[1], [0], [0], [1], [0, 0, 1, 1], [], []>} : vector<8x64xf32>, vector<64x128xf32>, vector<8x128xf32> -> vector<8x128xf32>
    %c0_3 = arith.constant 0 : index
    %c0_4 = arith.constant 0 : index
    %3 = vector.load %arg2[%c0_3, %c0_4] : memref<1x128xf32, #tpu.memory_space<vmem>>, vector<1x128xf32>
    %4 = vector.broadcast %3 : vector<1x128xf32> to vector<8x128xf32>
    %5 = arith.addf %2, %4 : vector<8x128xf32>
    %c0_5 = arith.constant 0 : index
    %c0_6 = arith.constant 0 : index
    %6 = vector.load %arg3[%c0_5, %c0_6] : memref<8x128xf32, #tpu.memory_space<vmem>>, vector<8x128xf32>
    tpu.vector_store %arg3[%c0_5, %c0_6], %5 {strides = array<i32>} : memref<8x128xf32, #tpu.memory_space<vmem>>, vector<8x128xf32>,
    return
  }
}

</mosaic_0001>

<bundles_post_ra>
// kernel: tpu_custom_call.1
= control target key start
LH: loop header
LB: loop body
LE: loop exit
PB: predicated region body
PF: predicated region fallthrough
CT: control target
= control target key end

     0   :  { %8 = vsyncpa [#allocation3], 0  ;;  %s223_s0 = inlined_call_operand.hbm [shape: f32[8,64], index: 0, kind: input, shape index: {}]   ;;  %s224_s1 = inlined_call_operand.hbm [shape: f32[64,128], index: 1, kind: input, shape index: {}]   ;;  %s225_s2 = inlined_call_operand.vmem [shape: f32[1,128], index: 2, kind: input, shape index: {}]   ;;  %s226_s3 = inlined_call_operand.hbm [shape: f32[8,128], index: 3, kind: output, shape index: {}]  }
   0x1   :  { %9 = vsyncpa [#allocation6], 0 }
   0x2   :  { %10 = vsyncpa [#allocation4], 0  ;;  %s16_s14 = sshll.u32 %s223_s0, 4  ;;  %s186_s15 = smov [#allocation2]   ;;  %s17_s14 = int_to_ptr.hbm [resolvable:$true] %s16_s14 }
   0x3   :  { %s18_s16 = sshll.u32 %s186_s15, 4  ;;  %s26_s19 = sshll.u32 %s224_s1, 4  ;;  %s19_s16 = int_to_ptr.vmem [resolvable:$true] %s18_s16  ;;  %s27_s19 = int_to_ptr.hbm [resolvable:$true] %s26_s19 }
   0x4   :  { %21 = dma.hbm_to_vmem [thread:$0]  %s17_s14, 128, %s19_s16, [#allocation3]  }
   0x5   :  { %s187_s20 = smov [#allocation5]   ;;  %s188_s22 = smov 128  }
   0x6   :  { %s28_s21 = sshll.u32 %s187_s20, 4  ;;  %s189_s23 = smov 8   ;;  %s29_s21 = int_to_ptr.vmem [resolvable:$true] %s28_s21 }
   0x7   :  { %34 = dma.hbm_to_vmem [thread:$0]  %s27_s19, 1024, %s29_s21, [#allocation6], %s188_s22, %s188_s22, %s189_s23  }
   0x8   :  { %180 = dma.done.wait [#allocation3], 128  }
   0x9   :  { %181 = vsyncadd [#allocation3], 4294967168 }
   0xa   :  { %182 = dma.done.wait [#allocation6], 1024  }
   0xb   :  { %183 = vsyncadd [#allocation6], 4294966272  ;;  %v53_v0 = vld [vmem:[#allocation5 + $0x38] sm:$0xff]  ;;  %v52_v1 = vld [vmem:[#allocation5 + $0x30] sm:$0xff]  ;;  %vm58_vm0 = vcmask 523264   ;;  %s190_s24 = smov [#allocation7]  }
   0xc   :  { %70 = vmatpush.msra.mxu0 %v53_v0  ;;  %v51_v2 = vld [vmem:[#allocation5 + $0x28] sm:$0xff]  ;;  %v50_v3 = vld [vmem:[#allocation5 + $0x20] sm:$0xff]  ;;  %v49_v4 = vld [vmem:[#allocation5 + $0x18] sm:$0xff]  ;;  %s88_s25 = sshll.u32 %s190_s24, 4  ;;  %s90_s28 = sshll.u32 %s226_s3, 4  ;;  %s89_s25 = int_to_ptr.vmem [resolvable:$true] %s88_s25  ;;  %s91_s28 = int_to_ptr.hbm [resolvable:$true] %s90_s28 }
   0xd   :  { %v48_v5 = vld [vmem:[#allocation5 + $0x10] sm:$0xff]  ;;  %v47_v6 = vld [vmem:[#allocation5 + $0x8] sm:$0xff]  ;;  %v46_v7 = vld [vmem:[#allocation5] sm:$0xff] }
   0xe   :  { %71 = vmatpush.msra.mxu0 %v52_v1  ;;  %v45_v8 = vld [vmem:[#allocation2] sm:$0xff] }
   0xf   :  { %v107_v9 = vld [vmem:[%s225_s2] ss:$0 sm:$0xff] }
  0x10   :  { %72 = vmatpush.msra.mxu0 %v51_v2 }
  0x12   :  { %73 = vmatpush.msra.mxu0 %v50_v3 }
  0x14   :  { %74 = vmatpush.msra.mxu0 %v49_v4 }
  0x16   :  { %75 = vmatpush.msra.mxu0 %v48_v5 }
  0x18   :  { %76 = vmatpush.msra.mxu0 %v47_v6 }
  0x1a   :  { %77 = vmatpush.msra.mxu0 %v46_v7 }
  0x1b   :  { %101 = vmatmul.msk.f32.vlgmr.msra.gmra.mxu0 %vm58_vm0, %v45_v8 }
  0x98   :  { %v79_v10 = vpop.f32.mrf.mxu0 }
  0x99   :  { %v80_v11 = vadd.f32 %v107_v9, %v79_v10 }
  0x9b   :  { %82 = vst [vmem:[#allocation7] sm:$0xff] %v80_v11 }
  0x9c   :  { %93 = dma.vmem_to_hbm [thread:$0]  %s89_s25, 128, %s91_s28, [#allocation4]  }
  0x9d   :  { %184 = dma.done.wait [#allocation4], 128  }
  0x9e   :  { %185 = vsyncadd [#allocation4], 4294967168 }
  0x9f   :  { %98 = vsyncpa [#allocation3], 1 }
  0xa0   :  { %99 = vsyncpa [#allocation6], 1 }
  0xa1   :  { %100 = vsyncpa [#allocation4], 1 }

</bundles_post_ra>
